<compile_context>
chip_gen: v7x
topology: tpu7x:2x2x1
jax: 0.10.0
libtpu: 0.0.40
codegen_flags: <defaults>
</compile_context>

<pallas_src>
import jax
import jax.numpy as jnp
from jax.experimental import pallas as pl
from jax.experimental.pallas import tpu as pltpu


def _skip_kernel(x1_ref, x2_ref, w1_ref, w2_ref, b_ref, o_ref):
    # x1_ref/x2_ref: (Nb, Cin, HWb)  channels on sublanes, spatial positions on lanes
    # w1_ref/w2_ref: (Co2, Cin)      conv weights with BN scale pre-folded
    # b_ref:         (Cout, 1)       BN bias column (beta - mean*gamma/std)
    # o_ref:         (Nb, Cout, HWb)
    nb = x1_ref.shape[0]
    co2 = w1_ref.shape[0]
    w1 = w1_ref[...]
    w2 = w2_ref[...]
    b1 = b_ref[:co2, :]
    b2 = b_ref[co2:, :]
    for b in range(nb):  # static unroll; Nb is kept small (<=16)
        a1 = jnp.maximum(x1_ref[b], 0.0)   # relu commutes with k=1 pool / zero shift
        a2 = jnp.maximum(x2_ref[b], 0.0)
        y1 = jnp.dot(w1, a1, preferred_element_type=jnp.float32)   # (Co2, HWb)
        y2 = jnp.dot(w2, a2, preferred_element_type=jnp.float32)
        # channel "concat" = write the two halves of the output block (lane-dense;
        # sublane-masked only when Co2 < 8, i.e. tiny configs like the test below).
        o_ref[b, :co2, :] = (y1 + b1).astype(o_ref.dtype)
        o_ref[b, co2:, :] = (y2 + b2).astype(o_ref.dtype)


def skip_connection_forward(x_nchw, w1, w2, gamma, beta, run_mean, run_var,
                            stride, eps=1e-5):
    """x_nchw: (N, Cin, H, W) f32.  w1/w2: (Cin, Cout//2).  Returns (N, Cout, Ho, Wo)."""
    N, Cin, H, W = x_nchw.shape
    Co2 = w1.shape[1]
    Cout = 2 * Co2

    # branch 1: plain strided subsample (avg_pool2d with k=1, stride=s)
    x1 = x_nchw[:, :, ::stride, ::stride]                     # (N, Cin, Ho, Wo)
    Ho, Wo = x1.shape[2], x1.shape[3]
    # branch 2: shift by (1,1) with zero pad, then subsample -> x[i*s+1, j*s+1] (0 if OOB)
    x2s = x_nchw[:, :, 1::stride, 1::stride]
    pad_h, pad_w = Ho - x2s.shape[2], Wo - x2s.shape[3]
    x2 = jnp.pad(x2s, ((0, 0), (0, 0), (0, pad_h), (0, pad_w))) if (pad_h or pad_w) else x2s

    HW = Ho * Wo
    # Free reshapes (no transpose / no concat / no padding of the lane axis).
    x1 = x1.reshape(N, Cin, HW).astype(jnp.float32)
    x2 = x2.reshape(N, Cin, HW).astype(jnp.float32)

    # Fold eval-mode BN scale into the 1x1 conv weights; bias becomes one column add.
    inv_std = 1.0 / jnp.sqrt(run_var.astype(jnp.float32) + eps)
    scale = gamma.astype(jnp.float32) * inv_std                       # (Cout,)
    bias = beta.astype(jnp.float32) - run_mean.astype(jnp.float32) * scale
    w1t = w1.T.astype(jnp.float32) * scale[:Co2, None]                # (Co2, Cin)
    w2t = w2.T.astype(jnp.float32) * scale[Co2:, None]                # (Co2, Cin)
    bias_col = bias.reshape(Cout, 1)

    # ---- tile selection: ~4 MiB of in+out bytes per grid step (review guidance) ----
    LANE = 128
    bytes_per_pos = (2 * Cin + Cout) * 4       # in+out bytes per (sample, position)
    TARGET = 4 << 20                           # per-step byte budget; 2x-buffered ~8 MiB
                                               # fits every generation's default VMEM limit
    if HW * bytes_per_pos >= TARGET:
        # Tile the spatial (lane) axis in 128-lane multiples; ragged last block is OK
        # (OOB lanes are lane-local garbage whose writes Pallas drops).
        HWb = max(LANE, (TARGET // bytes_per_pos) // LANE * LANE)
        HWb = min(HWb, pl.cdiv(HW, LANE) * LANE)
        Nb = 1
    else:
        HWb = HW                               # full lane extent per sample (always legal)
        nb_target = max(1, TARGET // (HW * bytes_per_pos))
        Nb = int(min(nb_target, N, 16))        # cap bounds the in-kernel unroll & VMEM
        while N % Nb:                          # keep an exact batch tiling
            Nb -= 1
    # Keep >= 2 grid steps so "parallel" semantics can shard across v7x's two TCs.
    if (N // Nb) * pl.cdiv(HW, HWb) < 2 and Nb > 1:
        Nb = max(1, Nb // 2)
        while N % Nb:
            Nb -= 1
    grid = (N // Nb, pl.cdiv(HW, HWb))

    out = pl.pallas_call(
        _skip_kernel,
        out_shape=jax.ShapeDtypeStruct((N, Cout, HW), jnp.float32),
        grid_spec=pltpu.PrefetchScalarGridSpec(
            num_scalar_prefetch=0,
            grid=grid,
            in_specs=[
                pl.BlockSpec((Nb, Cin, HWb), lambda n, m: (n, 0, m)),
                pl.BlockSpec((Nb, Cin, HWb), lambda n, m: (n, 0, m)),
                pl.BlockSpec((Co2, Cin), lambda n, m: (0, 0)),
                pl.BlockSpec((Co2, Cin), lambda n, m: (0, 0)),
                pl.BlockSpec((Cout, 1), lambda n, m: (0, 0)),
            ],
            out_specs=pl.BlockSpec((Nb, Cout, HWb), lambda n, m: (n, 0, m)),
        ),
        compiler_params=pltpu.CompilerParams(
            dimension_semantics=("parallel", "parallel")),
        cost_estimate=pl.CostEstimate(
            flops=2 * Cin * Cout * N * HW,
            transcendentals=0,
            bytes_accessed=(2 * Cin + Cout) * N * HW * 4),
    )(x1, x2, w1t, w2t, bias_col)

    return out.reshape(N, Cout, Ho, Wo)                               # free reshape, NCHW


def _reference(x_nchw, w1, w2, gamma, beta, run_mean, run_var, stride, eps=1e-5):
    """Pure-JAX reference mirroring the PyTorch forward (eval-mode BN)."""
    x = jax.nn.relu(x_nchw)
    y1 = x[:, :, ::stride, ::stride]
    y1 = jnp.einsum('nchw,cd->ndhw', y1, w1)
    y2 = jnp.pad(x[:, :, 1:, 1:], ((0, 0), (0, 0), (0, 1), (0, 1)))
    y2 = y2[:, :, ::stride, ::stride]
    y2 = jnp.einsum('nchw,cd->ndhw', y2, w2)
    z = jnp.concatenate([y1, y2], axis=1)
    inv_std = 1.0 / jnp.sqrt(run_var + eps)
    scale = (gamma * inv_std)[None, :, None, None]
    bias = (beta - run_mean * gamma * inv_std)[None, :, None, None]
    return z * scale + bias


if __name__ == "__main__":
    # Small, module-consistent shapes.
    N, Cin, H, W = 2, 4, 16, 16
    out_channels = 8
    stride = 2
    Co2 = out_channels // 2

    key = jax.random.PRNGKey(0)
    kx, k1, k2 = jax.random.split(key, 3)
    x = jax.random.normal(kx, (N, Cin, H, W), dtype=jnp.float32)

    # conv1/conv2 weights (PyTorch shape (Co2, Cin, 1, 1) -> stored as (Cin, Co2))
    w1 = jax.random.normal(k1, (Cin, Co2), dtype=jnp.float32) * 0.1
    w2 = jax.random.normal(k2, (Cin, Co2), dtype=jnp.float32) * 0.1

    # BatchNorm2d default init (eval mode).
    gamma = jnp.ones((out_channels,), jnp.float32)
    beta = jnp.zeros((out_channels,), jnp.float32)
    run_mean = jnp.zeros((out_channels,), jnp.float32)
    run_var = jnp.ones((out_channels,), jnp.float32)

    out = skip_connection_forward(x, w1, w2, gamma, beta, run_mean, run_var, stride)
    out = jax.block_until_ready(out)

    ref = _reference(x, w1, w2, gamma, beta, run_mean, run_var, stride)
    assert out.shape == (N, out_channels, H // stride, W // stride), out.shape
    assert jnp.allclose(out, ref, atol=1e-5, rtol=1e-5), "mismatch vs reference"

    print("KERNEL_OK")
</pallas_src>

<mosaic_0001>
module attributes {stable_mosaic.version = 11 : i64} {
  func.func @_skip_kernel(%arg0: i32, %arg1: i32, %arg2: memref<1x4x64xf32, #tpu.memory_space<vmem>>, %arg3: memref<1x4x64xf32, #tpu.memory_space<vmem>>, %arg4: memref<4x4xf32, #tpu.memory_space<vmem>>, %arg5: memref<4x4xf32, #tpu.memory_space<vmem>>, %arg6: memref<8x1xf32, #tpu.memory_space<vmem>>, %arg7: memref<1x8x64xf32, #tpu.memory_space<vmem>>) attributes {dimension_semantics = [#tpu.dimension_semantics<parallel>, #tpu.dimension_semantics<parallel>], iteration_bounds = array<i64: 2, 1>, scalar_prefetch = 0 : i64, scratch_operands = 0 : i64, tpu.core_type = #tpu.core_type<tc>, window_params = [{transform_indices = @transform_0, window_bounds = array<i64: 1, 4, 64>}, {transform_indices = @transform_1, window_bounds = array<i64: 1, 4, 64>}, {pipeline_mode = #tpu.pipeline_mode<synchronous>, transform_indices = @transform_2, window_bounds = array<i64: 4, 4>}, {pipeline_mode = #tpu.pipeline_mode<synchronous>, transform_indices = @transform_3, window_bounds = array<i64: 4, 4>}, {pipeline_mode = #tpu.pipeline_mode<synchronous>, transform_indices = @transform_4, window_bounds = array<i64: 8, 1>}, {transform_indices = @transform_5, window_bounds = array<i64: 1, 8, 64>}]} {
    %c0 = arith.constant 0 : index
    %c0_0 = arith.constant 0 : index
    %0 = vector.load %arg4[%c0, %c0_0] : memref<4x4xf32, #tpu.memory_space<vmem>>, vector<4x4xf32>
    %c0_1 = arith.constant 0 : index
    %c0_2 = arith.constant 0 : index
    %1 = vector.load %arg5[%c0_1, %c0_2] : memref<4x4xf32, #tpu.memory_space<vmem>>, vector<4x4xf32>
    %c0_3 = arith.constant 0 : index
    %c0_4 = arith.constant 0 : index
    %2 = vector.load %arg6[%c0_3, %c0_4] : memref<8x1xf32, #tpu.memory_space<vmem>>, vector<4x1xf32>
    %c4 = arith.constant 4 : index
    %c0_5 = arith.constant 0 : index
    %3 = vector.load %arg6[%c4, %c0_5] : memref<8x1xf32, #tpu.memory_space<vmem>>, vector<4x1xf32>
    %c0_6 = arith.constant 0 : index
    %c0_7 = arith.constant 0 : index
    %c0_8 = arith.constant 0 : index
    %4 = vector.load %arg2[%c0_6, %c0_7, %c0_8] : memref<1x4x64xf32, #tpu.memory_space<vmem>>, vector<1x4x64xf32>
    %5 = vector.shape_cast %4 : vector<1x4x64xf32> to vector<4x64xf32>
    %cst = arith.constant 0.000000e+00 : f32
    %6 = vector.broadcast %cst : f32 to vector<4x64xf32>
    %7 = arith.maximumf %5, %6 : vector<4x64xf32>
    %c0_9 = arith.constant 0 : index
    %c0_10 = arith.constant 0 : index
    %c0_11 = arith.constant 0 : index
    %8 = vector.load %arg3[%c0_9, %c0_10, %c0_11] : memref<1x4x64xf32, #tpu.memory_space<vmem>>, vector<1x4x64xf32>
    %9 = vector.shape_cast %8 : vector<1x4x64xf32> to vector<4x64xf32>
    %cst_12 = arith.constant 0.000000e+00 : f32
    %10 = vector.broadcast %cst_12 : f32 to vector<4x64xf32>
    %11 = arith.maximumf %9, %10 : vector<4x64xf32>
    %cst_13 = arith.constant dense<0.000000e+00> : vector<4x64xf32>
    %12 = tpu.matmul %0, %7, %cst_13 {dimension_numbers = #tpu.dot_dimension_numbers<[1], [0], [0], [1], [0, 0, 1, 1], [], []>} : vector<4x4xf32>, vector<4x64xf32>, vector<4x64xf32> -> vector<4x64xf32>
    %cst_14 = arith.constant dense<0.000000e+00> : vector<4x64xf32>
    %13 = tpu.matmul %1, %11, %cst_14 {dimension_numbers = #tpu.dot_dimension_numbers<[1], [0], [0], [1], [0, 0, 1, 1], [], []>} : vector<4x4xf32>, vector<4x64xf32>, vector<4x64xf32> -> vector<4x64xf32>
    %14 = vector.broadcast %2 : vector<4x1xf32> to vector<4x64xf32>
    %15 = arith.addf %12, %14 : vector<4x64xf32>
    %c0_15 = arith.constant 0 : index
    %c0_16 = arith.constant 0 : index
    %c0_17 = arith.constant 0 : index
    %16 = vector.load %arg7[%c0_15, %c0_16, %c0_17] : memref<1x8x64xf32, #tpu.memory_space<vmem>>, vector<1x4x64xf32>
    %17 = vector.shape_cast %16 : vector<1x4x64xf32> to vector<4x64xf32>
    %18 = vector.shape_cast %15 : vector<4x64xf32> to vector<1x4x64xf32>
    tpu.vector_store %arg7[%c0_15, %c0_16, %c0_17], %18 {strides = array<i32>} : memref<1x8x64xf32, #tpu.memory_space<vmem>>, vector<1x4x64xf32>,
    %19 = vector.broadcast %3 : vector<4x1xf32> to vector<4x64xf32>
    %20 = arith.addf %13, %19 : vector<4x64xf32>
    %c0_18 = arith.constant 0 : index
    %c4_19 = arith.constant 4 : index
    %c0_20 = arith.constant 0 : index
    %21 = vector.load %arg7[%c0_18, %c4_19, %c0_20] : memref<1x8x64xf32, #tpu.memory_space<vmem>>, vector<1x4x64xf32>
    %22 = vector.shape_cast %21 : vector<1x4x64xf32> to vector<4x64xf32>
    %23 = vector.shape_cast %20 : vector<4x64xf32> to vector<1x4x64xf32>
    tpu.vector_store %arg7[%c0_18, %c4_19, %c0_20], %23 {strides = array<i32>} : memref<1x8x64xf32, #tpu.memory_space<vmem>>, vector<1x4x64xf32>,
    return
  }
  func.func @transform_0(%arg0: i32, %arg1: i32) -> (i32, i32, i32) {
    %c0_i32 = arith.constant 0 : i32
    %c0_i32_0 = arith.constant 0 : i32
    return %arg0, %c0_i32, %arg1 : i32, i32, i32
  }
  func.func @transform_1(%arg0: i32, %arg1: i32) -> (i32, i32, i32) {
    %c0_i32 = arith.constant 0 : i32
    %c0_i32_0 = arith.constant 0 : i32
    return %arg0, %c0_i32, %arg1 : i32, i32, i32
  }
  func.func @transform_2(%arg0: i32, %arg1: i32) -> (i32, i32) {
    %c0_i32 = arith.constant 0 : i32
    %c0_i32_0 = arith.constant 0 : i32
    %c0_i32_1 = arith.constant 0 : i32
    return %c0_i32, %c0_i32_0 : i32, i32
  }
  func.func @transform_3(%arg0: i32, %arg1: i32) -> (i32, i32) {
    %c0_i32 = arith.constant 0 : i32
    %c0_i32_0 = arith.constant 0 : i32
    %c0_i32_1 = arith.constant 0 : i32
    return %c0_i32, %c0_i32_0 : i32, i32
  }
  func.func @transform_4(%arg0: i32, %arg1: i32) -> (i32, i32) {
    %c0_i32 = arith.constant 0 : i32
    %c0_i32_0 = arith.constant 0 : i32
    %c0_i32_1 = arith.constant 0 : i32
    return %c0_i32, %c0_i32_0 : i32, i32
  }
  func.func @transform_5(%arg0: i32, %arg1: i32) -> (i32, i32, i32) {
    %c0_i32 = arith.constant 0 : i32
    %c0_i32_0 = arith.constant 0 : i32
    return %arg0, %c0_i32, %arg1 : i32, i32, i32
  }
}

</mosaic_0001>

<bundles_post_ra>
// kernel: tpu_custom_call.1
= control target key start
LH: loop header
LB: loop body
LE: loop exit
PB: predicated region body
PF: predicated region fallthrough
CT: control target
= control target key end

     0   :  { %10 = vsyncpa [#allocation3], 0  ;;  %s1007_s0 = inlined_call_operand.vmem [shape: f32[2,4,64], index: 0, kind: input, shape index: {}]   ;;  %s1008_s1 = inlined_call_operand.hbm [shape: f32[2,4,64], index: 1, kind: input, shape index: {}]   ;;  %s1009_s2 = inlined_call_operand.vmem [shape: f32[4,4], index: 2, kind: input, shape index: {}]   ;;  %s1010_s3 = inlined_call_operand.vmem [shape: f32[4,4], index: 3, kind: input, shape index: {}]   ;;  %s1011_s4 = inlined_call_operand.vmem [shape: f32[8,1], index: 4, kind: input, shape index: {}]   ;;  %s1012_s5 = inlined_call_operand.hbm [shape: f32[2,8,64], index: 5, kind: output, shape index: {}]  }
   0x1   :  { %12 = vsyncpa [#allocation3 + $0x1], 0 }
   0x2   :  { %13 = vsyncpa [#allocation4], 0 }
   0x3   :  { %15 = vsyncpa [#allocation4 + $0x1], 0  ;;  %s817_s18 = smov 0   ;;  %s819_s19 = smov 0  }
   0x4   :  { %s821_s20 = smov 0   ;;  %s823_s21 = smov 0  }
   0x5   :  { %s825_s22 = smov 0   ;;  %s827_s23 = smov 0  }
   0x6 LB: > { %s570_s24 = sadd.s32 4294967295, %s780_s23   ;;  %s571_s25 = sadd.s32 4294967294, %s780_s23   ;;  %s780_s23 = sphi %s827_s23, %s21_s23   ;;  %s776_s22 = sphi %s825_s22, %s1028_s22   ;;  %s772_s21 = sphi %s823_s21, %s1027_s21   ;;  %s768_s20 = sphi %s821_s20, %s1026_s20   ;;  %s764_s19 = sphi %s819_s19, %s1025_s19   ;;  %s760_s18 = sphi %s817_s18, %s1024_s18  }
   0x7   : > { %s33_s26 = sadd.s32 1, %s776_s22  ;;  %s70_s27 = sadd.s32 1, %s768_s20 }
   0x8   : > { %p35_p0 = scmp.ge.s32.totalorder %s33_s26, 2  ;;  %p77_p1 = scmp.ne.s32.totalorder %s768_s20, %s764_s19 }
   0x9   : > { %p78_p2 = scmp.eq.s32.totalorder %s780_s23, 0  ;;  %p83_p3 = scmp.ne.s32.totalorder %s764_s19, %s760_s18 }
   0xa   : > { %s1030_s26 = smov (%p35_p0, %s33_s26), 0  ;;  %p84_p5 = scmp.eq.s32.totalorder %s570_s24, 0 }
   0xb   : > { %p858_p4 = por %p78_p2, %p77_p1  ;;  %s65_s29 = ssub.s32 %s776_s22, %s1030_s26 }
   0xc   : > { %p172_p6 = scmp.eq.s32.totalorder %s570_s24, 1  ;;  %p68_p7 = scmp.eq.s32.totalorder %s65_s29, 0 }
   0xd   : > { %p864_p8 = por %p84_p5, %p83_p3  ;;  %p178_p10 = scmp.eq.s32.totalorder %s571_s25, 1 }
   0xe   : > { %p868_p9 = por %p172_p6, %p77_p1  ;;  %p614_p13 = scmp.lt.s32.totalorder %s780_s23, 2 }
   0xf   : > { %s873_s7 = scalar_select %p68_p7, %s768_s20, %s70_s27  }
  0x10   : > { %s1016_s6 = scalar_select %p868_p9, 1, 0 }
  0x11   : > { %p875_p11 = por %p178_p10, %p83_p3  ;;  %s217_s9 = sand.u32 1, %s768_s20  }
  0x12   : > { %s574_s10 = sshll.u32 %s217_s9, 2  ;;  %s575_s11 = sshll.u32 %s776_s22, 6 }
  0x13   : > { %s1017_s8 = scalar_select %p875_p11, 1, 0 }
  0x14   : > { %s886_s14 = scalar_lea.hbm %s1008_s1, %s575_s11  ;;  %s221_s15 = scalar_lea.vmem [#allocation2], %s574_s10 }
  0x15   : > { %s229_s16 = sshll.u32 %s221_s15, 4  ;;  %p892_p0 = pnand %p614_p13, %p858_p4  ;;  %s888_s16 = int_to_ptr.vmem [resolvable:$true] %s229_s16 }
  0x16   : > { %s218_s24 = scalar_lea.sflag [#allocation3], %s217_s9  ;;  %s668_s25 = scalar_lea.hbm %s886_s14, 64 }
  0x17   : > { %p669_p3 = scmp.ne.s32.totalorder %s886_s14, %s668_s25  ;;  %p670_p5 = pneg %p892_p0 }
  0x18   : > { %s673_s28 = scalar_lea.hbm %s1008_s1, 128  ;;  %p674_p4 = scmp.lt.u32.totalorder %s886_s14, %s1008_s1 }
  0x19   : > { %p671_p6 = pnand %p670_p5, %p669_p3  ;;  %p675_p10 = scmp.lt.u32.totalorder %s673_s28, %s668_s25 }
  0x1a   : > { %p677_p12 = scmp.lt.u32.totalorder %s668_s25, %s886_s14 }
  0x1b   : > { %p672_p7 = pneg %p671_p6  ;;  %p676_p13 = por %p675_p10, %p674_p4 }
  0x1d   : > { %p678_p1 = por %p677_p12, %p676_p13 }
  0x1f   : > { %p679_p2 = pnand %p678_p1, %p672_p7 }
  0x21   : > { %682 = shalt.err (!%p679_p2)
}
  0x22   : > { %s683_s9 = scalar_lea.vmem %s888_s16, 64  ;;  %s782_s12 = smov [#allocation2]  }
  0x23   : > { %p684_p3 = scmp.ne.s32.totalorder %s888_s16, %s683_s9  ;;  %s688_s13 = sshll.u32 %s782_s12, 4  ;;  %s689_s13 = int_to_ptr.vmem [resolvable:$false] %s688_s13 }
  0x24   : > { %s690_s15 = scalar_lea.vmem %s689_s13, 128  ;;  %p691_p9 = scmp.lt.s32.totalorder %s888_s16, %s689_s13 }
  0x25   : > { %p686_p6 = pnand %p684_p3, %p670_p5  ;;  %p692_p4 = scmp.lt.s32.totalorder %s690_s15, %s683_s9 }
  0x27   : > { %p687_p11 = pneg %p686_p6  ;;  %p693_p10 = por %p692_p4, %p691_p9 }
  0x29   : > { %p694_p12 = pnand %p693_p10, %p687_p11 }
  0x2b   : > { %697 = shalt.err (!%p694_p12)
}
  0x2c   : > { %609 = dma.hbm_to_vmem [thread:$0]  (!%p892_p0), %s886_s14, 64, %s888_s16, %s218_s24  }
  0x2d   : > { %p1019_p1 = scmp.lt.s32.totalorder %s780_s23, 3  ;;  %p1020_p2 = scmp.ge.s32.totalorder %s780_s23, 1 }
  0x2f   : > { %p235_p5 = pnand %p1020_p2, %p1019_p1 }
  0x30   : > { %s928_s25 = sand.u32 (!%p235_p5), 1, %s764_s19  }
  0x31   : > { %238 = sbr.rel (%p235_p5) target bundleno = 295 (0x127), region = 40  ;;  %s577_s27 = sshll.u32 (!%p235_p5), %s928_s25, 2 }
  0x32   : > { %s241_s29 = scalar_lea.sflag (!%p235_p5), [#allocation3], %s928_s25  ;;  %s244_s28 = scalar_lea.vmem (!%p235_p5), [#allocation2], %s577_s27 }
  0x38   : > { %751 = dma.done.wait (%p864_p8), %s241_s29, 64  }
  0x39   : > { %753 = vsyncadd (%p864_p8), %s241_s29, 4294967232  ;;  %p278_p9 = scmp.lt.s32.totalorder %s772_s21, 1  ;;  %v783_v0 = vmov 0.0   ;;  %vm784_vm0 = vmmov 0   ;;  %v785_v1 = vmov 0   ;;  %vm302_vm1 = vcmask 1043456  }
  0x3a   : > { %592 = vmatprep.subr.mxu0 %v783_v0  ;;  %597 = vmatprep.subr.mxu1 %v783_v0  ;;  %vm298_vm2 = vcmask 31744   ;;  %v291_v3 = vld [vmem:[%s244_s28] sm:$0xf]  ;;  %s578_s28 = sshll.u32 %s928_s25, 3  ;;  %vm376_vm3 = vcmask 519168   ;;  %p1021_p11 = scmp.ne.s32.totalorder %s1016_s6, 0 }
  0x3b   : > { %s279_s14 = scalar_select %p278_p9, %s772_s21, 1  ;;  %594 = vmatprep.mubr.msk.f32.mxu0 %vm784_vm0, %v783_v0  ;;  %599 = vmatprep.mubr.msk.f32.mxu1 %vm784_vm0, %v783_v0  ;;  %v285_v4 = vld [vmem:[%s1009_s2] sm:$0xf]  ;;  %v292_v6 = vmax.f32 %v291_v3, 0.0  ;;  %v288_v9 = vld [vmem:[%s1011_s4 + $0x4] sm:$0xf] }
  0x3c   : > { %667 = vset.pattern.permute.xlu0 %v785_v1  ;;  %v286_v7 = vld [vmem:[%s1010_s3] sm:$0xf]  ;;  %s786_s9 = smov [#allocation5]  }
  0x3d   : > { %s579_s16 = sshll.u32 %s279_s14, 2  ;;  %v287_v8 = vld [vmem:[%s1011_s4] sm:$0xf]  ;;  %598 = vmatpush3.msk.msra.mxu1 %vm302_vm1, %v292_v6  ;;  %s585_s14 = sshll.u32 %s772_s21, 7 }
  0x3e   : > { %s284_s10 = scalar_lea.vmem %s1007_s0, %s579_s16  ;;  %295 = vperm.xlu0 %667, %v287_v8   ;;  %600 = vmatmul.mubr.msk.f32.vlgmr.msra.gmra.mrb[0].mxu1 %vm298_vm2, %v286_v7  ;;  %s277_s16 = scalar_lea.vmem [#allocation5], %s578_s28 }
  0x3f   : > { %v289_v2 = vld [vmem:[%s284_s10] sm:$0xf]  ;;  %s475_s17 = sshll.u32 %s277_s16, 4  ;;  %s958_s30 = scalar_lea.hbm %s1012_s5, %s585_s14  ;;  %s960_s17 = int_to_ptr.vmem [resolvable:$true] %s475_s17 }
  0x40   : > { %v290_v5 = vmax.f32 %v289_v2, 0.0  ;;  %s461_s21 = scalar_lea.sflag [#allocation4], %s928_s25  ;;  %s698_s11 = scalar_lea.vmem %s960_s17, 128 }
  0x41   : > { %p699_p8 = scmp.ne.s32.totalorder %s960_s17, %s698_s11  ;;  %s702_s12 = sshll.u32 %s786_s9, 4  ;;  %s703_s12 = int_to_ptr.vmem [resolvable:$false] %s702_s12 }
  0x42   : > { %593 = vmatpush3.msk.msra.mxu0 %vm302_vm1, %v290_v5  ;;  %380 = vperm.xlu0 %667, %v288_v9   ;;  %s704_s13 = scalar_lea.vmem %s703_s12, 256  ;;  %p705_p13 = scmp.lt.s32.totalorder %s960_s17, %s703_s12 }
  0x43   : > { %595 = vmatmul.mubr.msk.f32.vlgmr.msra.gmra.mrb[0].mxu0 %vm298_vm2, %v285_v4  ;;  %p700_p0 = pnand %p699_p8, %p1021_p11  ;;  %p706_p3 = scmp.lt.s32.totalorder %s704_s13, %s698_s11 }
  0x45   : > { %p701_p7 = pneg %p700_p0  ;;  %p707_p6 = por %p706_p3, %p705_p13 }
  0x47   : > { %p708_p4 = pnand %p707_p6, %p701_p7 }
  0xbd   : > { %v296_v10 = vpop.permute.xlu0 %295 }
  0xc1   : > { %v381_v11 = vpop.permute.xlu0 %380 }
 0x111   : > { %v455_v13 = vpop.f32.mrb[0].mxu1 }
 0x112   : > { %v456_v15 = vadd.f32 %v455_v13, %v381_v11  ;;  %v601_v17 = vpop.f32.mrb[1].mxu1 }
 0x114   : > { %459 = vst.msk [vmem:[%s277_s16 + $0x4] sm:$0xf] %vm376_vm3, %v456_v15 }
 0x116   : > { %v372_v12 = vpop.f32.mrb[0].mxu0 }
 0x117   : > { %v373_v14 = vadd.f32 %v372_v12, %v296_v10  ;;  %v596_v16 = vpop.f32.mrb[1].mxu0 }
 0x119   : > { %377 = vst.msk [vmem:[%s277_s16] sm:$0xf] %vm376_vm3, %v373_v14 }
 0x11a   : > { %711 = shalt.err (!%p708_p4)
}
 0x11b   : > { %s712_s25 = scalar_lea.hbm %s958_s30, 128  ;;  %s716_s29 = scalar_lea.hbm %s1012_s5, 256 }
 0x11c   : > { %p713_p10 = scmp.ne.s32.totalorder %s958_s30, %s712_s25  ;;  %p717_p2 = scmp.lt.u32.totalorder %s958_s30, %s1012_s5 }
 0x11d   : > { %p718_p5 = scmp.lt.u32.totalorder %s716_s29, %s712_s25  ;;  %p720_p8 = scmp.lt.u32.totalorder %s712_s25, %s958_s30 }
 0x11e   : > { %p714_p12 = pnand %p713_p10, %p1021_p11 }
 0x11f   : > { %p719_p9 = por %p718_p5, %p717_p2 }
 0x120   : > { %p715_p1 = pneg %p714_p12 }
 0x121   : > { %p721_p0 = por %p720_p8, %p719_p9 }
 0x123   : > { %p722_p7 = pnand %p721_p0, %p715_p1 }
 0x125   : > { %725 = shalt.err (!%p722_p7)
}
 0x126   : > { %604 = dma.vmem_to_hbm [thread:$0]  (%p1021_p11), %s960_s17, 128, %s958_s30, %s461_s21  }
 0x127 PF: > { %s487_s16 = sand.u32 1, %s760_s18   ;;  %p1022_p13 = scmp.ne.s32.totalorder %s1017_s8, 0 }
 0x128   : > { %p1023_p3 = scmp.ge.s32.totalorder %s780_s23, 2  ;;  %s488_s24 = scalar_lea.sflag [#allocation4], %s487_s16 }
 0x12a   : > { %p611_p6 = pnand %p1023_p3, %p1022_p13 }
 0x12c   : > { %755 = dma.done.wait (!%p611_p6), %s488_s24, 128  }
 0x12d   : > { %757 = vsyncadd (!%p611_p6), %s488_s24, 4294967168  ;;  %s21_s23 = sadd.s32 1, %s780_s23   ;;  %s1024_s18 = smov %s764_s19 }
 0x12e   : > { %p18_p4 = scmp.ge.s32.totalorder %s21_s23, 4   ;;  %s1025_s19 = smov %s768_s20 }
 0x12f   : > { %s1026_s20 = smov %s873_s7  ;;  %s1027_s21 = smov %s776_s22 }
 0x130   : > { %s1028_s22 = smov %s1030_s26  ;;  %20 = sbr.rel (!%p18_p4) target bundleno = 6 (0x6), region = 88 }
 0x137   :  { %493 = vsyncpa [#allocation3], 1 }
 0x138   :  { %495 = vsyncpa [#allocation3 + $0x1], 1 }
 0x139   :  { %496 = vsyncpa [#allocation4], 1 }
 0x13a   :  { %498 = vsyncpa [#allocation4 + $0x1], 1 }

</bundles_post_ra>
